<compile_context>
chip_gen: v5e
topology: v5e:2x2
jax: 0.10.0
libtpu: 0.0.40
codegen_flags: <defaults>
</compile_context>

<pallas_src>
import functools

import jax
import jax.numpy as jnp
from jax import lax
from jax.experimental import pallas as pl
from jax.experimental.pallas import tpu as pltpu

_NEG_INF = -1e30  # finite "minus infinity": keeps max()/exp() NaN-free


def _round_up(x: int, m: int) -> int:
    return ((x + m - 1) // m) * m


def _mnrl5_kernel(q_ref, d_ref, out_ref, m_sc, l_sc, pos_sc, *, pad_cols: int):
    i = pl.program_id(0)               # query-row tile ("parallel")
    j = pl.program_id(1)               # doc-column tile (reduction axis)
    tm = q_ref.shape[0]
    tn = d_ref.shape[0]

    @pl.when(j == 0)
    def _init():
        m_sc[...] = jnp.full_like(m_sc, _NEG_INF)
        l_sc[...] = jnp.zeros_like(l_sc)
        pos_sc[...] = jnp.zeros_like(pos_sc)

    # Operands are pre-normalized in the wrapper (temperature folded into q),
    # so this matmul directly yields the scaled cosine-similarity tile.
    s = lax.dot_general(q_ref[...], d_ref[...], (((1,), (1,)), ((), ())),
                        preferred_element_type=jnp.float32)       # (tm, tn) f32

    # Positive pair: global row g's positive is global column g.  Only doc
    # tiles overlapping this query tile's diagonal range can contain one.
    row0 = i * tm
    col0 = j * tn
    overlaps = jnp.logical_and(col0 < row0 + tm, col0 + tn > row0)

    @pl.when(overlaps)
    def _grab_positive():
        g_row = row0 + lax.broadcasted_iota(jnp.int32, (tm, tn), 0)
        g_col = col0 + lax.broadcasted_iota(jnp.int32, (tm, tn), 1)
        pos_sc[...] += jnp.sum(jnp.where(g_row == g_col, s, 0.0),
                               axis=-1, keepdims=True)

    # Streaming log-sum-exp over the doc axis (running max m, running sum l).
    m_prev = m_sc[...]
    m_new = jnp.maximum(m_prev, jnp.max(s, axis=-1, keepdims=True))
    l_sc[...] = (jnp.exp(m_prev - m_new) * l_sc[...]
                 + jnp.sum(jnp.exp(s - m_new), axis=-1, keepdims=True))
    m_sc[...] = m_new

    @pl.when(j == pl.num_programs(1) - 1)
    def _finalize():
        m = m_sc[...]
        l = l_sc[...]
        pos = pos_sc[...]
        if pad_cols:  # static Python check; no per-step masking anywhere.
            # Padded doc rows are exact zero vectors -> each contributed
            # exactly exp(0 - m) to l.  Subtract them here once; floor at
            # exp(pos - m) since the true denominator >= the numerator.
            l = jnp.maximum(l - pad_cols * jnp.exp(-m), jnp.exp(pos - m))
        # -log(numerator / denominator) = logsumexp(row) - s_positive.
        # Padded query rows produce garbage here but are sliced off outside.
        per_row = (m + jnp.log(l)) - pos                           # (tm, 1)
        out_ref[...] = jnp.broadcast_to(per_row, out_ref.shape)    # lane-dense


def mnrl5_loss(embeddings_q: jax.Array, embeddings_d: jax.Array,
               scale: float = 20.0, *, block_q: int = 256, block_d: int = 128,
               operand_dtype=None) -> jax.Array:
    """Pallas implementation of MultipleNegativesRankingLoss5.forward.

    embeddings_q: (B, D) query sentence embeddings (reps[0]).
    embeddings_d: (N, D) concatenated doc embeddings (torch.cat(reps[1:]));
                  row i must be the positive for query i (N >= B).
    block_q/block_d: query-row / doc-column tile sizes (tm, tn).  Defaults
                  (256, 128) are safe everywhere; on v6e/v7x use block_d=256
                  to fill the 256-wide MXU and block_q=512 to cut d-stream HBM
                  traffic (keep 2*(tm+tn)*D*itemsize under the scoped-VMEM
                  budget — 16 MiB v5e, 32 MiB v6e/v7x defaults, 64 MiB v7x
                  physical).  On v7x prefer block_q <= B/2 so the "parallel"
                  query axis spans both TensorCores.
    operand_dtype: optional on-chip matmul operand dtype (e.g. jnp.bfloat16)
                  for full-rate MXU and half the HBM d-stream; accumulation
                  and the log-sum-exp stay in f32.
    Returns the scalar f32 loss.
    """
    B, D = embeddings_q.shape
    N, D2 = embeddings_d.shape
    assert D == D2 and N >= B

    op_dtype = jnp.dtype(operand_dtype) if operand_dtype is not None \
        else embeddings_q.dtype

    # One-shot normalization in the wrapper (hoisted out of the kernel's
    # doc loop entirely).  1/max(||x||,1e-12) == rsqrt(max(||x||^2,1e-24)).
    q32 = embeddings_q.astype(jnp.float32)
    d32 = embeddings_d.astype(jnp.float32)
    q_inv = lax.rsqrt(jnp.maximum(jnp.sum(q32 * q32, -1, keepdims=True), 1e-24))
    d_inv = lax.rsqrt(jnp.maximum(jnp.sum(d32 * d32, -1, keepdims=True), 1e-24))
    qn = (q32 * (q_inv * float(scale))).astype(op_dtype)   # scale folded into q
    dn = (d32 * d_inv).astype(op_dtype)

    tm = _round_up(min(int(block_q), _round_up(B, 8)), 8)
    tn = _round_up(min(int(block_d), _round_up(N, 8)), 8)
    num_i = pl.cdiv(B, tm)
    num_j = pl.cdiv(N, tn)
    b_pad, n_pad = num_i * tm, num_j * tn
    if b_pad != B:
        qn = jnp.pad(qn, ((0, b_pad - B), (0, 0)))
    if n_pad != N:
        dn = jnp.pad(dn, ((0, n_pad - N), (0, 0)))
    pad_cols = n_pad - N

    itemsize = jnp.dtype(op_dtype).itemsize
    cost = pl.CostEstimate(
        flops=2 * b_pad * n_pad * D,
        transcendentals=b_pad * n_pad,                       # exp per logit
        bytes_accessed=(num_i * n_pad * D + b_pad * D) * itemsize
                       + b_pad * 128 * 4,
    )

    # VMEM budget: double-buffered operand blocks + output block + scratch.
    vmem_est = (2 * (tm * D + tn * D) * itemsize
                + 2 * tm * 128 * 4 + 3 * tm * 128 * 4 + (1 << 20))
    cp_kwargs = dict(dimension_semantics=("parallel", "arbitrary"))
    if vmem_est > (16 << 20):
        # Cap at v7x's 64 MiB physical VMEM; larger tiles must be shrunk.
        cp_kwargs["vmem_limit_bytes"] = min(vmem_est + (4 << 20), 64 << 20)

    per_row = pl.pallas_call(
        functools.partial(_mnrl5_kernel, pad_cols=pad_cols),
        out_shape=jax.ShapeDtypeStruct((b_pad, 128), jnp.float32),
        grid_spec=pltpu.PrefetchScalarGridSpec(
            num_scalar_prefetch=0,
            grid=(num_i, num_j),                              # reduction axis last
            in_specs=[
                pl.BlockSpec((tm, D), lambda i, j: (i, 0)),   # query rows (resident over j)
                pl.BlockSpec((tn, D), lambda i, j: (j, 0)),   # doc rows (streamed)
            ],
            out_specs=pl.BlockSpec((tm, 128), lambda i, j: (i, 0)),
            scratch_shapes=[
                pltpu.VMEM((tm, 1), jnp.float32),             # running max m
                pltpu.VMEM((tm, 1), jnp.float32),             # running sum l
                pltpu.VMEM((tm, 1), jnp.float32),             # positive logit
            ],
        ),
        compiler_params=pltpu.CompilerParams(**cp_kwargs),
        cost_estimate=cost,
    )(qn, dn)

    # Final tiny reduction (and 1/batchsize) outside the kernel: drop padded
    # query rows, take lane 0 of the lane-broadcast per-row losses.
    return jnp.sum(per_row[:B, 0]) / B


def mnrl5_loss_ref(embeddings_q, embeddings_d, scale=20.0):
    """Pure-JAX reference matching the PyTorch module semantics."""
    qn = embeddings_q / jnp.maximum(
        jnp.linalg.norm(embeddings_q, axis=-1, keepdims=True), 1e-12)
    dn = embeddings_d / jnp.maximum(
        jnp.linalg.norm(embeddings_d, axis=-1, keepdims=True), 1e-12)
    qd = jnp.exp((qn @ dn.T) * scale)
    B, N = qd.shape
    mask = jnp.concatenate([jnp.eye(B), jnp.zeros((B, N - B))], axis=1)
    numerator = jnp.sum(qd * mask, axis=-1)
    denominator = jnp.sum(qd, axis=-1)
    return jnp.sum(-(1.0 / B) * jnp.log(numerator / denominator))


if __name__ == "__main__":
    # TODO(synk): the SentenceTransformer encoder producing `reps` is an
    # external model; its embeddings are the inputs of this loss kernel.
    key = jax.random.PRNGKey(0)
    keys = jax.random.split(key, 6)

    # --- Case 1: tiny single-tile problem (blocks clamp to the full extents).
    B1, D1 = 16, 32
    reps1 = [jax.random.normal(keys[0], (B1, D1), jnp.float32),   # queries
             jax.random.normal(keys[1], (B1, D1), jnp.float32),   # positives
             jax.random.normal(keys[2], (B1, D1), jnp.float32)]   # negatives
    q1 = reps1[0]
    d1 = jnp.concatenate(reps1[1:], axis=0)                       # (32, 32)
    ref1 = mnrl5_loss_ref(q1, d1, scale=20.0)
    out1 = mnrl5_loss(q1, d1, scale=20.0)
    jax.block_until_ready(out1)
    assert jnp.allclose(out1, ref1, rtol=5e-2, atol=5e-2), (out1, ref1)

    # --- Case 2: rectangular tiles (tm=40 > tn=24), 2 query-row tiles x 6 doc
    # tiles, padded query rows (80 > 64) and padded doc columns (144 > 128):
    # exercises the streaming LSE, the cross-tile diagonal positive pick-up
    # and the padded-column finalize correction.
    B2, D2 = 64, 32
    reps2 = [jax.random.normal(keys[3], (B2, D2), jnp.float32),
             jax.random.normal(keys[4], (B2, D2), jnp.float32),
             jax.random.normal(keys[5], (B2, D2), jnp.float32)]
    q2 = reps2[0]
    d2 = jnp.concatenate(reps2[1:], axis=0)                       # (128, 32)
    ref2 = mnrl5_loss_ref(q2, d2, scale=20.0)
    out2 = mnrl5_loss(q2, d2, scale=20.0, block_q=40, block_d=24)
    jax.block_until_ready(out2)
    assert jnp.allclose(out2, ref2, rtol=5e-2, atol=5e-2), (out2, ref2)

    # --- Case 3: bf16 matmul operands (recommended on-chip dtype).
    out3 = mnrl5_loss(q2, d2, scale=20.0, block_q=40, block_d=24,
                      operand_dtype=jnp.bfloat16)
    jax.block_until_ready(out3)
    assert jnp.allclose(out3, ref2, rtol=1e-1, atol=1e-1), (out3, ref2)

    print("KERNEL_OK")
</pallas_src>

<mosaic_0001>
module attributes {stable_mosaic.version = 11 : i64} {
  func.func @_mnrl5_kernel(%arg0: i32, %arg1: i32, %arg2: memref<16x32xf32, #tpu.memory_space<vmem>>, %arg3: memref<32x32xf32, #tpu.memory_space<vmem>>, %arg4: memref<16x128xf32, #tpu.memory_space<vmem>>, %arg5: memref<16x1xf32, #tpu.memory_space<vmem>>, %arg6: memref<16x1xf32, #tpu.memory_space<vmem>>, %arg7: memref<16x1xf32, #tpu.memory_space<vmem>>) attributes {dimension_semantics = [#tpu.dimension_semantics<parallel>, #tpu.dimension_semantics<arbitrary>], iteration_bounds = array<i64: 1, 1>, scalar_prefetch = 0 : i64, scratch_operands = 3 : i64, tpu.core_type = #tpu.core_type<tc>, window_params = [{transform_indices = @transform_0, window_bounds = array<i64: 16, 32>}, {transform_indices = @transform_1, window_bounds = array<i64: 32, 32>}, {transform_indices = @transform_2, window_bounds = array<i64: 16, 128>}]} {
    %c0_i32 = arith.constant 0 : i32
    %0 = arith.cmpi eq, %arg1, %c0_i32 : i32
    %1 = arith.extui %0 : i1 to i32
    %c0_i32_0 = arith.constant 0 : i32
    %2 = arith.cmpi ne, %1, %c0_i32_0 : i32
    scf.if %2 {
      %cst_19 = arith.constant -1.000000e+30 : f32
      %34 = vector.broadcast %cst_19 : f32 to vector<16x1xf32>
      %c0_20 = arith.constant 0 : index
      %c0_21 = arith.constant 0 : index
      %35 = vector.load %arg5[%c0_20, %c0_21] : memref<16x1xf32, #tpu.memory_space<vmem>>, vector<16x1xf32>
      tpu.vector_store %arg5[%c0_20, %c0_21], %34 {strides = array<i32>} : memref<16x1xf32, #tpu.memory_space<vmem>>, vector<16x1xf32>,
      %cst_22 = arith.constant 0.000000e+00 : f32
      %36 = vector.broadcast %cst_22 : f32 to vector<16x1xf32>
      %c0_23 = arith.constant 0 : index
      %c0_24 = arith.constant 0 : index
      %37 = vector.load %arg6[%c0_23, %c0_24] : memref<16x1xf32, #tpu.memory_space<vmem>>, vector<16x1xf32>
      tpu.vector_store %arg6[%c0_23, %c0_24], %36 {strides = array<i32>} : memref<16x1xf32, #tpu.memory_space<vmem>>, vector<16x1xf32>,
      %cst_25 = arith.constant 0.000000e+00 : f32
      %38 = vector.broadcast %cst_25 : f32 to vector<16x1xf32>
      %c0_26 = arith.constant 0 : index
      %c0_27 = arith.constant 0 : index
      %39 = vector.load %arg7[%c0_26, %c0_27] : memref<16x1xf32, #tpu.memory_space<vmem>>, vector<16x1xf32>
      tpu.vector_store %arg7[%c0_26, %c0_27], %38 {strides = array<i32>} : memref<16x1xf32, #tpu.memory_space<vmem>>, vector<16x1xf32>,
    } else {
    }
    %c0 = arith.constant 0 : index
    %c0_1 = arith.constant 0 : index
    %3 = vector.load %arg2[%c0, %c0_1] : memref<16x32xf32, #tpu.memory_space<vmem>>, vector<16x32xf32>
    %c0_2 = arith.constant 0 : index
    %c0_3 = arith.constant 0 : index
    %4 = vector.load %arg3[%c0_2, %c0_3] : memref<32x32xf32, #tpu.memory_space<vmem>>, vector<32x32xf32>
    %cst = arith.constant dense<0.000000e+00> : vector<16x32xf32>
    %5 = tpu.matmul %3, %4, %cst {dimension_numbers = #tpu.dot_dimension_numbers<[1], [1], [0], [0], [0, 0, 1, 0], [], []>} : vector<16x32xf32>, vector<32x32xf32>, vector<16x32xf32> -> vector<16x32xf32>
    %c16_i32 = arith.constant 16 : i32
    %6 = arith.muli %arg0, %c16_i32 : i32
    %c32_i32 = arith.constant 32 : i32
    %7 = arith.muli %arg1, %c32_i32 : i32
    %c16_i32_4 = arith.constant 16 : i32
    %8 = arith.addi %6, %c16_i32_4 : i32
    %9 = arith.cmpi slt, %7, %8 : i32
    %c32_i32_5 = arith.constant 32 : i32
    %10 = arith.addi %7, %c32_i32_5 : i32
    %11 = arith.cmpi sgt, %10, %6 : i32
    %12 = arith.andi %9, %11 : i1
    %13 = arith.extui %12 : i1 to i32
    %c0_i32_6 = arith.constant 0 : i32
    %14 = arith.cmpi ne, %13, %c0_i32_6 : i32
    scf.if %14 {
      %34 = tpu.iota {dimensions = array<i32: 0>} : vector<16x32xi32>
      %35 = vector.broadcast %6 : i32 to vector<16x32xi32>
      %36 = arith.addi %35, %34 : vector<16x32xi32>
      %37 = tpu.iota {dimensions = array<i32: 1>} : vector<16x32xi32>
      %38 = vector.broadcast %7 : i32 to vector<16x32xi32>
      %39 = arith.addi %38, %37 : vector<16x32xi32>
      %c0_19 = arith.constant 0 : index
      %c0_20 = arith.constant 0 : index
      %40 = vector.load %arg7[%c0_19, %c0_20] : memref<16x1xf32, #tpu.memory_space<vmem>>, vector<16x1xf32>
      %41 = arith.cmpi eq, %36, %39 : vector<16x32xi32>
      %cst_21 = arith.constant 0.000000e+00 : f32
      %42 = vector.broadcast %cst_21 : f32 to vector<16x32xf32>
      %43 = arith.select %41, %5, %42 : vector<16x32xi1>, vector<16x32xf32>
      %cst_22 = arith.constant dense<0.000000e+00> : vector<16xf32>
      %44 = vector.multi_reduction <add>, %43, %cst_22 [1] : vector<16x32xf32> to vector<16xf32>
      %45 = vector.shape_cast %44 : vector<16xf32> to vector<16x1xf32>
      %46 = arith.addf %40, %45 : vector<16x1xf32>
      %c0_23 = arith.constant 0 : index
      %c0_24 = arith.constant 0 : index
      %47 = vector.load %arg7[%c0_23, %c0_24] : memref<16x1xf32, #tpu.memory_space<vmem>>, vector<16x1xf32>
      tpu.vector_store %arg7[%c0_23, %c0_24], %46 {strides = array<i32>} : memref<16x1xf32, #tpu.memory_space<vmem>>, vector<16x1xf32>,
    } else {
    }
    %c0_7 = arith.constant 0 : index
    %c0_8 = arith.constant 0 : index
    %15 = vector.load %arg5[%c0_7, %c0_8] : memref<16x1xf32, #tpu.memory_space<vmem>>, vector<16x1xf32>
    %cst_9 = arith.constant dense<0xFF800000> : vector<16xf32>
    %16 = vector.multi_reduction <maximumf>, %5, %cst_9 [1] : vector<16x32xf32> to vector<16xf32>
    %17 = vector.shape_cast %16 : vector<16xf32> to vector<16x1xf32>
    %18 = arith.maximumf %15, %17 : vector<16x1xf32>
    %19 = arith.subf %15, %18 : vector<16x1xf32>
    %20 = math.exp %19 : vector<16x1xf32>
    %c0_10 = arith.constant 0 : index
    %c0_11 = arith.constant 0 : index
    %21 = vector.load %arg6[%c0_10, %c0_11] : memref<16x1xf32, #tpu.memory_space<vmem>>, vector<16x1xf32>
    %22 = arith.mulf %20, %21 : vector<16x1xf32>
    %23 = vector.broadcast %18 : vector<16x1xf32> to vector<16x32xf32>
    %24 = arith.subf %5, %23 : vector<16x32xf32>
    %25 = math.exp %24 : vector<16x32xf32>
    %cst_12 = arith.constant dense<0.000000e+00> : vector<16xf32>
    %26 = vector.multi_reduction <add>, %25, %cst_12 [1] : vector<16x32xf32> to vector<16xf32>
    %27 = vector.shape_cast %26 : vector<16xf32> to vector<16x1xf32>
    %28 = arith.addf %22, %27 : vector<16x1xf32>
    %c0_13 = arith.constant 0 : index
    %c0_14 = arith.constant 0 : index
    %29 = vector.load %arg6[%c0_13, %c0_14] : memref<16x1xf32, #tpu.memory_space<vmem>>, vector<16x1xf32>
    tpu.vector_store %arg6[%c0_13, %c0_14], %28 {strides = array<i32>} : memref<16x1xf32, #tpu.memory_space<vmem>>, vector<16x1xf32>,
    %c0_15 = arith.constant 0 : index
    %c0_16 = arith.constant 0 : index
    %30 = vector.load %arg5[%c0_15, %c0_16] : memref<16x1xf32, #tpu.memory_space<vmem>>, vector<16x1xf32>
    tpu.vector_store %arg5[%c0_15, %c0_16], %18 {strides = array<i32>} : memref<16x1xf32, #tpu.memory_space<vmem>>, vector<16x1xf32>,
    %c0_i32_17 = arith.constant 0 : i32
    %31 = arith.cmpi eq, %arg1, %c0_i32_17 : i32
    %32 = arith.extui %31 : i1 to i32
    %c0_i32_18 = arith.constant 0 : i32
    %33 = arith.cmpi ne, %32, %c0_i32_18 : i32
    scf.if %33 {
      %c0_19 = arith.constant 0 : index
      %c0_20 = arith.constant 0 : index
      %34 = vector.load %arg5[%c0_19, %c0_20] : memref<16x1xf32, #tpu.memory_space<vmem>>, vector<16x1xf32>
      %c0_21 = arith.constant 0 : index
      %c0_22 = arith.constant 0 : index
      %35 = vector.load %arg6[%c0_21, %c0_22] : memref<16x1xf32, #tpu.memory_space<vmem>>, vector<16x1xf32>
      %c0_23 = arith.constant 0 : index
      %c0_24 = arith.constant 0 : index
      %36 = vector.load %arg7[%c0_23, %c0_24] : memref<16x1xf32, #tpu.memory_space<vmem>>, vector<16x1xf32>
      %37 = math.log %35 : vector<16x1xf32>
      %38 = arith.addf %34, %37 : vector<16x1xf32>
      %39 = arith.subf %38, %36 : vector<16x1xf32>
      %40 = vector.shape_cast %39 : vector<16x1xf32> to vector<16x1xf32>
      %41 = vector.broadcast %40 : vector<16x1xf32> to vector<16x128xf32>
      %c0_25 = arith.constant 0 : index
      %c0_26 = arith.constant 0 : index
      %42 = vector.load %arg4[%c0_25, %c0_26] : memref<16x128xf32, #tpu.memory_space<vmem>>, vector<16x128xf32>
      tpu.vector_store %arg4[%c0_25, %c0_26], %41 {strides = array<i32>} : memref<16x128xf32, #tpu.memory_space<vmem>>, vector<16x128xf32>,
    } else {
    }
    return
  }
  func.func @transform_0(%arg0: i32, %arg1: i32) -> (i32, i32) {
    %c0_i32 = arith.constant 0 : i32
    %c0_i32_0 = arith.constant 0 : i32
    return %arg0, %c0_i32 : i32, i32
  }
  func.func @transform_1(%arg0: i32, %arg1: i32) -> (i32, i32) {
    %c0_i32 = arith.constant 0 : i32
    %c0_i32_0 = arith.constant 0 : i32
    return %arg1, %c0_i32 : i32, i32
  }
  func.func @transform_2(%arg0: i32, %arg1: i32) -> (i32, i32) {
    %c0_i32 = arith.constant 0 : i32
    %c0_i32_0 = arith.constant 0 : i32
    return %arg0, %c0_i32 : i32, i32
  }
}

</mosaic_0001>

<bundles_post_ra>
// kernel: tpu_custom_call.1
= control target key start
LH: loop header
LB: loop body
LE: loop exit
PB: predicated region body
PF: predicated region fallthrough
CT: control target
= control target key end

     0   :  { %7 = vsyncpa [#allocation6], 0  ;;  %s419_s0 = inlined_call_operand.hbm [shape: f32[16,32], index: 0, kind: input, shape index: {}]   ;;  %s420_s1 = inlined_call_operand.hbm [shape: f32[32,32], index: 1, kind: input, shape index: {}]   ;;  %s421_s2 = inlined_call_operand.hbm [shape: f32[16,128], index: 2, kind: output, shape index: {}]  }
   0x1   :  { %8 = vsyncpa [#allocation9], 0 }
   0x2   :  { %9 = vsyncpa [#allocation7], 0  ;;  %s14_s11 = sshll.u32 %s419_s0, 4  ;;  %s349_s12 = smov [#allocation5]   ;;  %s15_s11 = int_to_ptr.hbm [resolvable:$true] %s14_s11 }
   0x3   :  { %s16_s13 = sshll.u32 %s349_s12, 4  ;;  %s27_s16 = sshll.u32 %s420_s1, 4  ;;  %s17_s13 = int_to_ptr.vmem [resolvable:$true] %s16_s13  ;;  %s28_s16 = int_to_ptr.hbm [resolvable:$true] %s27_s16 }
   0x4   :  { %s350_s17 = smov 128   ;;  %s351_s18 = smov 8  }
   0x5   :  { %22 = dma.hbm_to_vmem [thread:$0]  %s15_s11, 256, %s17_s13, [#allocation6], %s350_s17, %s350_s17, %s351_s18  }
   0x6   :  { %s352_s19 = smov [#allocation8]  }
   0x7   :  { %s29_s20 = sshll.u32 %s352_s19, 4  ;;  %s30_s20 = int_to_ptr.vmem [resolvable:$true] %s29_s20 }
   0x8   :  { %35 = dma.hbm_to_vmem [thread:$0]  %s28_s16, 512, %s30_s20, [#allocation9], %s350_s17, %s350_s17, %s351_s18  }
   0x9   :  { %343 = dma.done.wait [#allocation6], 256  }
   0xa   :  { %344 = vsyncadd [#allocation6], 4294967040 }
   0xb   :  { %345 = dma.done.wait [#allocation9], 512  }
   0xc   :  { %346 = vsyncadd [#allocation9], 4294966784  ;;  %vm61_vm0 = vcmask 261120   ;;  %v60_v0 = vld [vmem:[#allocation8 + $0x18] sm:$0xff]  ;;  %v59_v1 = vld [vmem:[#allocation8 + $0x10] sm:$0xff]  ;;  %v113_v6 = vlaneseq  ;;  %vm48_vm2 = vcmask 7168  }
   0xd   :  { %238 = vmatpush.xpose.msk.msra.mxu0 %vm61_vm0, %v60_v0  ;;  %244 = vmatpush.xpose.msk.msra.mxu1 %vm61_vm0, %v60_v0  ;;  %v58_v2 = vld [vmem:[#allocation8 + $0x8] sm:$0xff]  ;;  %v57_v3 = vld [vmem:[#allocation8] sm:$0xff]  ;;  %v55_v4 = vld [vmem:[#allocation5] sm:$0xff]  ;;  %v353_v10 = vmov -1e+30   ;;  %v354_v17 = vmov 0  }
   0xe   :  { %v56_v5 = vld [vmem:[#allocation5 + $0x8] sm:$0xff]  ;;  %v114_v7 = vshrl.u32 %v113_v6, 7  ;;  %v120_v8 = vand.u32 127, %v113_v6  ;;  %49 = vst.msk [vmem:[#allocation2] sm:$0xff] %vm48_vm2, %v353_v10  ;;  %256 = vset.pattern.permute.xlu1 %v354_v17  ;;  %257 = vset.pattern.permute.xlu2 %v354_v17  ;;  %v355_v18 = vmov 0.0   ;;  %s356_s0 = smov [#allocation10]  }
   0xf   :  { %50 = vst.msk [vmem:[#allocation2 + $0x8] sm:$0xff] %vm48_vm2, %v353_v10  ;;  %258 = vset.pattern.permute.xlu0 %v354_v17  ;;  %s222_s1 = sshll.u32 %s356_s0, 4  ;;  %s224_s23 = sshll.u32 %s421_s2, 4  ;;  %s223_s1 = int_to_ptr.vmem [resolvable:$true] %s222_s1  ;;  %s225_s23 = int_to_ptr.hbm [resolvable:$true] %s224_s23 }
  0x10   :  { %v115_v9 = vadd.s32 8, %v114_v7  ;;  %vm125_vm3 = vcmp.eq.s32.totalorder %v114_v7, %v120_v8  ;;  %53 = vst.msk [vmem:[#allocation4] sm:$0xff] %vm48_vm2, %v355_v18 }
  0x11   :  { %239 = vmatpush.xpose.msk.msra.mxu0 %vm61_vm0, %v59_v1  ;;  %245 = vmatpush.xpose.msk.msra.mxu1 %vm61_vm0, %v59_v1  ;;  %51 = vst.msk [vmem:[#allocation3] sm:$0xff] %vm48_vm2, %v355_v18 }
  0x12   :  { %vm126_vm1 = vcmp.eq.s32.totalorder %v115_v9, %v120_v8  ;;  %52 = vst.msk [vmem:[#allocation3 + $0x8] sm:$0xff] %vm48_vm2, %v355_v18 }
  0x13   :  { %54 = vst.msk [vmem:[#allocation4 + $0x8] sm:$0xff] %vm48_vm2, %v355_v18 }
  0x15   :  { %240 = vmatpush.xpose.msk.msra.mxu0 %vm61_vm0, %v58_v2  ;;  %246 = vmatpush.xpose.msk.msra.mxu1 %vm61_vm0, %v58_v2  ;;  %v140_v19 = vld [vmem:[#allocation2] sm:$0xff] }
  0x16   :  { %v141_v23 = vld [vmem:[#allocation2 + $0x8] sm:$0xff] }
  0x17   :  { %v123_v27 = vld [vmem:[#allocation4] sm:$0xff] }
  0x18   :  { %v156_v48 = vld [vmem:[#allocation3] sm:$0xff] }
  0x19   :  { %241 = vmatpush.xpose.msk.msra.mxu0 %vm61_vm0, %v57_v3  ;;  %247 = vmatpush.xpose.msk.msra.mxu1 %vm61_vm0, %v57_v3  ;;  %v157_v53 = vld [vmem:[#allocation3 + $0x8] sm:$0xff] }
  0x1a   :  { %v124_v42 = vld [vmem:[#allocation4 + $0x8] sm:$0xff] }
  0x1c   :  { %242 = vmatmul.msk.f32.vlgmr.msra.gmra.mxu0 %vm61_vm0, %v55_v4  ;;  %243 = vmatmul.msk.f32.vlgmr.msra.gmra.mxu1 %vm61_vm0, %v56_v5 }
  0x99   :  { %v97_v11 = vpop.f32.mrf.mxu0  ;;  %v100_v13 = vpop.f32.mrf.mxu1 }
  0x9a   :  { %v142_v12 = vsel %vm61_vm0, %v97_v11, -inf  ;;  %v145_v14 = vsel %vm61_vm0, %v100_v13, -inf  ;;  %v127_v15 = vsel %vm125_vm3, %v97_v11, 0.0  ;;  %v128_v30 = vsel %vm126_vm1, %v100_v13, 0.0 }
  0x9b   :  { %143 = vmax.xlane.f32.xlu0 %v142_v12  ;;  %v129_v16 = vsel %vm61_vm0, %v127_v15, 0.0  ;;  %v132_v31 = vsel %vm61_vm0, %v128_v30, 0.0 }
  0xa3   :  { %146 = vmax.xlane.f32.xlu0 %v145_v14 }
  0xab   :  { %130 = vadd.xlane.f32.xlu0 %v129_v16 }
 0x10e   :  { %v144_v20 = vpop.xlane.xlu0 %143 }
 0x10f   :  { %v148_v21 = vmax.f32 %v140_v19, %v144_v20 }
 0x111   :  { %v150_v22 = vsub.f32 %v140_v19, %v148_v21  ;;  %187 = vst.msk [vmem:[#allocation2] sm:$0xff] %vm48_vm2, %v148_v21  ;;  %162 = vperm.xlu1 %256, %v148_v21  }
 0x113   :  { %v152_v45 = vmul.f32 1.442695, %v150_v22 }
 0x116   :  { %v147_v24 = vpop.xlane.xlu0 %146 }
 0x117   :  { %v149_v25 = vmax.f32 %v141_v23, %v147_v24 }
 0x118   :  { %v192_v61 = vld [vmem:[#allocation2] sm:$0xff] }
 0x119   :  { %v151_v26 = vsub.f32 %v141_v23, %v149_v25  ;;  %188 = vst.msk [vmem:[#allocation2 + $0x8] sm:$0xff] %vm48_vm2, %v149_v25  ;;  %167 = vperm.xlu1 %256, %v149_v25  }
 0x11b   :  { %v154_v46 = vmul.f32 1.442695, %v151_v26 }
 0x11e   :  { %v131_v28 = vpop.xlane.xlu0 %130 }
 0x11f   :  { %v135_v29 = vadd.f32 %v131_v28, %v123_v27 }
 0x120   :  { %v193_v3 = vld [vmem:[#allocation2 + $0x8] sm:$0xff] }
 0x121   :  { %138 = vst.msk [vmem:[#allocation4] sm:$0xff] %vm48_vm2, %v135_v29 }
 0x128   :  { %v196_v63 = vld [vmem:[#allocation4] sm:$0xff] }
 0x143   :  { %133 = vadd.xlane.f32.xlu1 %v132_v31 }
 0x183   :  { %v163_v32 = vpop.permute.xlu1 %162 }
 0x184   :  { %v170_v33 = vsub.f32 %v97_v11, %v163_v32 }
 0x186   :  { %v172_v34 = vmul.f32 1.442695, %v170_v33 }
 0x188   :  { %259 = vpow2.f32 %v172_v34 }
 0x18b   :  { %v168_v35 = vpop.permute.xlu1 %167 }
 0x18c   :  { %v171_v36 = vsub.f32 %v100_v13, %v168_v35 }
 0x18e   :  { %v260_v37 = vpop.eup %259  ;;  %v174_v38 = vmul.f32 1.442695, %v171_v36 }
 0x18f   :  { %v176_v39 = vsel %vm61_vm0, %v260_v37, 0.0 }
 0x190   :  { %261 = vpow2.f32 %v174_v38  ;;  %177 = vadd.xlane.f32.xlu2 %v176_v39 }
 0x191   :  { %263 = vpow2.f32 %v152_v45 }
 0x192   :  { %265 = vpow2.f32 %v154_v46 }
 0x196   :  { %v262_v40 = vpop.eup %261 }
 0x197   :  { %v179_v41 = vsel %vm61_vm0, %v262_v40, 0.0  ;;  %v264_v47 = vpop.eup %263 }
 0x198   :  { %180 = vadd.xlane.f32.xlu2 %v179_v41  ;;  %v158_v49 = vmul.f32 %v264_v47, %v156_v48  ;;  %v266_v52 = vpop.eup %265 }
 0x199   :  { %v159_v54 = vmul.f32 %v266_v52, %v157_v53 }
 0x1b6   :  { %v134_v43 = vpop.xlane.xlu1 %133 }
 0x1b7   :  { %v136_v44 = vadd.f32 %v134_v43, %v124_v42 }
 0x1b9   :  { %139 = vst.msk [vmem:[#allocation4 + $0x8] sm:$0xff] %vm48_vm2, %v136_v44 }
 0x1c0   :  { %v197_v5 = vld [vmem:[#allocation4 + $0x8] sm:$0xff] }
 0x203   :  { %v178_v50 = vpop.xlane.xlu2 %177 }
 0x204   :  { %v182_v51 = vadd.f32 %v178_v50, %v158_v49 }
 0x206   :  { %185 = vst.msk [vmem:[#allocation3] sm:$0xff] %vm48_vm2, %v182_v51 }
 0x20b   :  { %v181_v55 = vpop.xlane.xlu2 %180 }
 0x20c   :  { %v183_v56 = vadd.f32 %v181_v55, %v159_v54 }
 0x20d   :  { %v194_v57 = vld [vmem:[#allocation3] sm:$0xff] }
 0x20e   :  { %186 = vst.msk [vmem:[#allocation3 + $0x8] sm:$0xff] %vm48_vm2, %v183_v56  ;;  %267 = vlog2.f32 %v194_v57 }
 0x214   :  { %v268_v58 = vpop.eup %267 }
 0x215   :  { %v199_v59 = vmul.f32 0.6931472, %v268_v58  ;;  %v195_v60 = vld [vmem:[#allocation3 + $0x8] sm:$0xff] }
 0x216   :  { %269 = vlog2.f32 %v195_v60 }
 0x217   :  { %v202_v62 = vadd.f32 %v199_v59, %v192_v61 }
 0x219   :  { %v204_v0 = vsub.f32 %v202_v62, %v196_v63 }
 0x21b   :  { %208 = vperm.xlu2 %257, %v204_v0  }
 0x21c   :  { %v270_v1 = vpop.eup %269 }
 0x21d   :  { %v201_v2 = vmul.f32 0.6931472, %v270_v1 }
 0x21f   :  { %v203_v4 = vadd.f32 %v201_v2, %v193_v3 }
 0x221   :  { %v205_v6 = vsub.f32 %v203_v4, %v197_v5 }
 0x223   :  { %213 = vperm.xlu0 %258, %v205_v6  }
 0x275   :  { %v209_v7 = vpop.permute.xlu2 %208 }
 0x276   :  { %216 = vst [vmem:[#allocation10] sm:$0xff] %v209_v7 }
 0x295   :  { %v214_v8 = vpop.permute.xlu0 %213 }
 0x296   :  { %217 = vst [vmem:[#allocation10 + $0x8] sm:$0xff] %v214_v8 }
 0x297   :  { %230 = dma.vmem_to_hbm [thread:$0]  %s223_s1, 256, %s225_s23, [#allocation7], %s350_s17, %s350_s17, %s351_s18  }
 0x298   :  { %347 = dma.done.wait [#allocation7], 256  }
 0x299   :  { %348 = vsyncadd [#allocation7], 4294967040 }
 0x29a   :  { %235 = vsyncpa [#allocation6], 1 }
 0x29b   :  { %236 = vsyncpa [#allocation9], 1 }
 0x29c   :  { %237 = vsyncpa [#allocation7], 1 }

</bundles_post_ra>
